<compile_context>
chip_gen: v6e
topology: v6e:2x2x1
jax: 0.10.0
libtpu: 0.0.40
codegen_flags: <defaults>
</compile_context>

<pallas_src>
import jax
import jax.numpy as jnp
from jax.experimental import pallas as pl
from jax.experimental.pallas import tpu as pltpu


def _round_up(x, m):
    return ((x + m - 1) // m) * m


def classifier_kernel(x_ref, w_ref, b_ref, o_ref):
    n_out = o_ref.shape[-1]
    # In-kernel f32 -> bf16 cast of the streamed input (no extra HBM pass),
    # bf16 x bf16 matmul with f32 accumulation on the MXU.  Weight columns
    # beyond n_out are zero-padded (lane-dense MXU tile), so the padded
    # logit columns are exactly 0 and are dropped by the slice below.
    x_bf = x_ref[...].astype(jnp.bfloat16)
    logits_p = jnp.dot(x_bf, w_ref[...], preferred_element_type=jnp.float32)
    logits = logits_p[:, :n_out] + b_ref[...]          # real columns only, f32
    # Numerically stable log_softmax along the last dim (f32 epilogue).
    m = jnp.max(logits, axis=-1, keepdims=True)
    shifted = logits - m
    lse = jnp.log(jnp.sum(jnp.exp(shifted), axis=-1, keepdims=True))
    # Un-padded store: only the real n_out columns ever reach HBM.
    o_ref[...] = (shifted - lse).astype(o_ref.dtype)


def classifier_forward(x, w_t, b, *, tn_max=8192, xla_fallback_rows=0):
    """x: (N, n_hid) f32, w_t: (n_hid, n_out) f32, b: (n_out,) f32.

    xla_fallback_rows: if N <= this, skip Pallas and let XLA fuse the tiny
    matmul + log_softmax (launch overhead dominates at tiny N).  Default 0 so
    the Pallas path is always exercised here.
    """
    N, n_hid = x.shape
    n_out = w_t.shape[1]

    if N <= xla_fallback_rows:
        return jnp.squeeze(jax.nn.log_softmax(x @ w_t + b[None, :], axis=-1))

    # --- resident weight: zero-pad columns to 128 lanes, cast to bf16 -------
    # (tiny: n_hid x 128 bf16 = 8 KiB; keeps the MXU tile lane-dense, the pad
    # never leaves VMEM and is sliced off inside the kernel before the
    # reduction, so no -inf bias trick is needed.)
    n_out_p = max(128, _round_up(n_out, 128))
    w_bf = jnp.pad(w_t, ((0, 0), (0, n_out_p - n_out))).astype(jnp.bfloat16)
    b2 = b.reshape(1, n_out).astype(jnp.float32)

    # --- row tiling: no row padding, partial last block handled by Pallas ---
    tn = min(tn_max, _round_up(N, 8))      # multiple of 8 (f32 sublanes)
    grid = (pl.cdiv(N, tn),)

    cost = pl.CostEstimate(
        flops=2 * N * n_hid * n_out_p,
        transcendentals=N * (n_out + 1),                 # exp per col + log
        bytes_accessed=(x.size * 4 + w_bf.size * 2
                        + b2.size * 4 + N * n_out * 4),
    )

    out = pl.pallas_call(
        classifier_kernel,
        out_shape=jax.ShapeDtypeStruct((N, n_out), jnp.float32),
        grid_spec=pltpu.PrefetchScalarGridSpec(
            num_scalar_prefetch=0,
            grid=grid,
            in_specs=[
                pl.BlockSpec((tn, n_hid), lambda i: (i, 0)),      # streamed f32
                pl.BlockSpec((n_hid, n_out_p), lambda i: (0, 0)),  # resident bf16
                pl.BlockSpec((1, n_out), lambda i: (0, 0)),        # resident bias
            ],
            out_specs=pl.BlockSpec((tn, n_out), lambda i: (i, 0)),
        ),
        compiler_params=pltpu.CompilerParams(
            # Shards rows across v7x's two TensorCores; neutral on v5e/v6e.
            # TODO(synk): on v7x, evaluate pltpu.CORE_PARALLEL here once tn is
            # capped so the grid has >= 2 steps.
            dimension_semantics=("parallel",),
        ),
        cost_estimate=cost,
    )(x, w_bf, b2)

    # torch: log_softmax(tx.squeeze(), dim=-1); identity for N>1, n_out>1.
    return jnp.squeeze(out)


if __name__ == "__main__":
    # Classifier(n_hid=32, n_out=16), batch of 8 node embeddings.
    N, n_hid, n_out = 8, 32, 16

    key = jax.random.PRNGKey(0)
    kx, kw, kb = jax.random.split(key, 3)

    x = jax.random.normal(kx, (N, n_hid), dtype=jnp.float32)

    # Deterministic Linear init (PyTorch default: U(-1/sqrt(n_hid), 1/sqrt(n_hid)))
    bound = 1.0 / (n_hid ** 0.5)
    w = jax.random.uniform(kw, (n_out, n_hid), minval=-bound, maxval=bound,
                           dtype=jnp.float32)
    b = jax.random.uniform(kb, (n_out,), minval=-bound, maxval=bound,
                           dtype=jnp.float32)
    w_t = w.T  # (n_hid, n_out)

    out = classifier_forward(x, w_t, b)
    out = jax.block_until_ready(out)
    assert out.shape == (N, n_out)
    assert bool(jnp.all(jnp.isfinite(out)))

    # Tight check vs a reference that matches the kernel's bf16-input /
    # f32-accumulate matmul precision.
    x_bf = x.astype(jnp.bfloat16).astype(jnp.float32)
    w_bf = w_t.astype(jnp.bfloat16).astype(jnp.float32)
    ref_bf16 = jax.nn.log_softmax(x_bf @ w_bf + b, axis=-1)
    assert jnp.allclose(out, ref_bf16, atol=1e-4, rtol=1e-4)

    # Loose check vs the full-f32 reference (bf16 input rounding only).
    ref_f32 = jax.nn.log_softmax(x @ w_t + b, axis=-1)
    assert jnp.allclose(out, ref_f32, atol=5e-2, rtol=5e-2)

    print("KERNEL_OK")
</pallas_src>

<mosaic_0001>
module attributes {stable_mosaic.version = 11 : i64} {
  func.func @classifier_kernel(%arg0: i32, %arg1: memref<8x32xf32, #tpu.memory_space<vmem>>, %arg2: memref<32x128xbf16, #tpu.memory_space<vmem>>, %arg3: memref<1x16xf32, #tpu.memory_space<vmem>>, %arg4: memref<8x16xf32, #tpu.memory_space<vmem>>) attributes {dimension_semantics = [#tpu.dimension_semantics<parallel>], iteration_bounds = array<i64: 1>, scalar_prefetch = 0 : i64, scratch_operands = 0 : i64, tpu.core_type = #tpu.core_type<tc>, window_params = [{transform_indices = @transform_0, window_bounds = array<i64: 8, 32>}, {pipeline_mode = #tpu.pipeline_mode<synchronous>, transform_indices = @transform_1, window_bounds = array<i64: 32, 128>}, {pipeline_mode = #tpu.pipeline_mode<synchronous>, transform_indices = @transform_2, window_bounds = array<i64: 1, 16>}, {transform_indices = @transform_3, window_bounds = array<i64: 8, 16>}]} {
    %c0 = arith.constant 0 : index
    %c0_0 = arith.constant 0 : index
    %0 = vector.load %arg1[%c0, %c0_0] : memref<8x32xf32, #tpu.memory_space<vmem>>, vector<8x32xf32>
    %1 = arith.truncf %0 : vector<8x32xf32> to vector<8x32xbf16>
    %c0_1 = arith.constant 0 : index
    %c0_2 = arith.constant 0 : index
    %2 = vector.load %arg2[%c0_1, %c0_2] : memref<32x128xbf16, #tpu.memory_space<vmem>>, vector<32x128xbf16>
    %cst = arith.constant dense<0.000000e+00> : vector<8x128xf32>
    %3 = tpu.matmul %1, %2, %cst {dimension_numbers = #tpu.dot_dimension_numbers<[1], [0], [0], [1], [0, 0, 1, 1], [], []>} : vector<8x32xbf16>, vector<32x128xbf16>, vector<8x128xf32> -> vector<8x128xf32>
    %4 = vector.extract_strided_slice %3 {offsets = [0, 0], sizes = [8, 16], strides = [1, 1]} : vector<8x128xf32> to vector<8x16xf32>
    %c0_3 = arith.constant 0 : index
    %c0_4 = arith.constant 0 : index
    %5 = vector.load %arg3[%c0_3, %c0_4] : memref<1x16xf32, #tpu.memory_space<vmem>>, vector<1x16xf32>
    %6 = vector.broadcast %5 : vector<1x16xf32> to vector<8x16xf32>
    %7 = arith.addf %4, %6 : vector<8x16xf32>
    %cst_5 = arith.constant dense<0xFF800000> : vector<8xf32>
    %8 = vector.multi_reduction <maximumf>, %7, %cst_5 [1] : vector<8x16xf32> to vector<8xf32>
    %9 = vector.shape_cast %8 : vector<8xf32> to vector<8x1xf32>
    %10 = vector.broadcast %9 : vector<8x1xf32> to vector<8x16xf32>
    %11 = arith.subf %7, %10 : vector<8x16xf32>
    %12 = math.exp %11 : vector<8x16xf32>
    %cst_6 = arith.constant dense<0.000000e+00> : vector<8xf32>
    %13 = vector.multi_reduction <add>, %12, %cst_6 [1] : vector<8x16xf32> to vector<8xf32>
    %14 = vector.shape_cast %13 : vector<8xf32> to vector<8x1xf32>
    %15 = math.log %14 : vector<8x1xf32>
    %16 = vector.broadcast %15 : vector<8x1xf32> to vector<8x16xf32>
    %17 = arith.subf %11, %16 : vector<8x16xf32>
    %c0_7 = arith.constant 0 : index
    %c0_8 = arith.constant 0 : index
    %18 = vector.load %arg4[%c0_7, %c0_8] : memref<8x16xf32, #tpu.memory_space<vmem>>, vector<8x16xf32>
    tpu.vector_store %arg4[%c0_7, %c0_8], %17 {strides = array<i32>} : memref<8x16xf32, #tpu.memory_space<vmem>>, vector<8x16xf32>,
    return
  }
  func.func @transform_0(%arg0: i32) -> (i32, i32) {
    %c0_i32 = arith.constant 0 : i32
    %c0_i32_0 = arith.constant 0 : i32
    return %arg0, %c0_i32 : i32, i32
  }
  func.func @transform_1(%arg0: i32) -> (i32, i32) {
    %c0_i32 = arith.constant 0 : i32
    %c0_i32_0 = arith.constant 0 : i32
    %c0_i32_1 = arith.constant 0 : i32
    return %c0_i32, %c0_i32_0 : i32, i32
  }
  func.func @transform_2(%arg0: i32) -> (i32, i32) {
    %c0_i32 = arith.constant 0 : i32
    %c0_i32_0 = arith.constant 0 : i32
    %c0_i32_1 = arith.constant 0 : i32
    return %c0_i32, %c0_i32_0 : i32, i32
  }
  func.func @transform_3(%arg0: i32) -> (i32, i32) {
    %c0_i32 = arith.constant 0 : i32
    %c0_i32_0 = arith.constant 0 : i32
    return %arg0, %c0_i32 : i32, i32
  }
}

</mosaic_0001>

<bundles_post_ra>
// kernel: tpu_custom_call.1
= control target key start
LH: loop header
LB: loop body
LE: loop exit
PB: predicated region body
PF: predicated region fallthrough
CT: control target
= control target key end

     0   :  { %8 = vsyncpa [#allocation3], 0  ;;  %s278_s0 = inlined_call_operand.hbm [shape: f32[8,32], index: 0, kind: input, shape index: {}]   ;;  %s279_s1 = inlined_call_operand.hbm [shape: bf16[32,128], index: 1, kind: input, shape index: {}]   ;;  %s280_s2 = inlined_call_operand.vmem [shape: f32[1,16], index: 2, kind: input, shape index: {}]   ;;  %s281_s3 = inlined_call_operand.hbm [shape: f32[8,16], index: 3, kind: output, shape index: {}]  }
   0x1   :  { %9 = vsyncpa [#allocation6], 0 }
   0x2   :  { %10 = vsyncpa [#allocation4], 0  ;;  %s236_s12 = smov [#allocation2]   ;;  %s237_s14 = smov [#allocation5]  }
   0x3   :  { %s17_s13 = sshll.u32 %s236_s12, 4  ;;  %s26_s15 = sshll.u32 %s237_s14, 4  ;;  %s18_s13 = int_to_ptr.vmem [resolvable:$true] %s17_s13  ;;  %s27_s15 = int_to_ptr.vmem [resolvable:$true] %s26_s15 }
   0x4   :  { %s178_s16 = scalar_lea.vmem %s18_s13, 128  ;;  %p183_p1 = scmp.lt.s32.totalorder %s18_s13, %s18_s13 }
   0x5   :  { %p179_p0 = scmp.ne.s32.totalorder %s18_s13, %s178_s16  ;;  %p184_p2 = scmp.lt.s32.totalorder %s178_s16, %s178_s16 }
   0x7   :  { %p185_p3 = por %p184_p2, %p183_p1 }
   0x9   :  { %p186_p4 = pnand %p185_p3, %p179_p0 }
   0xb   :  { %189 = shalt.err (!%p186_p4)
}
   0xc   :  { %20 = dma.hbm_to_vmem [thread:$0]  %s278_s0, 128, %s18_s13, [#allocation3]  }
   0xd   :  { %s198_s19 = scalar_lea.vmem %s27_s15, 256  ;;  %p203_p6 = scmp.lt.s32.totalorder %s27_s15, %s27_s15 }
   0xe   :  { %p199_p5 = scmp.ne.s32.totalorder %s27_s15, %s198_s19  ;;  %p204_p7 = scmp.lt.s32.totalorder %s198_s19, %s198_s19 }
  0x10   :  { %p205_p8 = por %p204_p7, %p203_p6 }
  0x12   :  { %p206_p9 = pnand %p205_p8, %p199_p5 }
  0x14   :  { %209 = shalt.err (!%p206_p9)
}
  0x15   :  { %s238_s20 = smov 64   ;;  %s239_s21 = smov 4  }
  0x16   :  { %32 = dma.hbm_to_vmem [thread:$0]  %s279_s1, 256, %s27_s15, [#allocation6], %s238_s20, %s238_s20, %s239_s21  }
  0x17   :  { %230 = dma.done.wait [#allocation3], 128  }
  0x18   :  { %231 = vsyncadd [#allocation3], 4294967168 }
  0x19   :  { %232 = dma.done.wait [#allocation6], 256  }
  0x1a   :  { %233 = vsyncadd [#allocation6], 4294967040  ;;  %v240_v0 = vmov 0.0   ;;  %vm241_vm0 = vmmov 0   ;;  %v164_v1 = vld [vmem:[#allocation5 + $0x8] sm:$0xff]   ;;  %v165_v2 = vld [vmem:[#allocation5] sm:$0xff]  }
  0x1b   :  { %149 = vmatprep.subr.bf16.mxu0 %v240_v0  ;;  %153 = vmatprep.mubr.msk.bf16.mxu0 %vm241_vm0, %v240_v0  ;;  %v42_v3 = vld [vmem:[#allocation2] sm:$0xff]  ;;  %vm60_vm1 = vcmask 261120   ;;  %vm112_vm2 = vcmask 130048   ;;  %s242_s1 = smov [#allocation7]  }
  0x1c   :  { %150 = vmatpush3.bf16.msra.mxu0 %v164_v1  ;;  %v43_v4 = vpack.c.bf16 %v42_v3, %v42_v3  ;;  %v145_v5 = vld [vmem:[%s280_s2] ss:$0 sm:$0xff]  ;;  %s132_s2 = sshll.u32 %s242_s1, 4  ;;  %s133_s2 = int_to_ptr.vmem [resolvable:$true] %s132_s2 }
  0x1d   :  { %151 = vmatprep.subr.bf16.mxu0 %v240_v0  ;;  %s210_s25 = scalar_lea.vmem %s133_s2, 128  ;;  %p215_p11 = scmp.lt.s32.totalorder %s133_s2, %s133_s2 }
  0x1e   :  { %p211_p10 = scmp.ne.s32.totalorder %s133_s2, %s210_s25  ;;  %p216_p12 = scmp.lt.s32.totalorder %s210_s25, %s210_s25 }
  0x20   :  { %152 = vmatpush3.bf16.msra.mxu0 %v165_v2  ;;  %p217_p13 = por %p216_p12, %p215_p11 }
  0x22   :  { %p218_p0 = pnand %p217_p13, %p211_p10 }
  0x23   :  { %154 = vmatmul.mubr.msk.bf16.vlgmr.msra.gmra.mxu0 %vm60_vm1, %v43_v4 }
  0xe3   :  { %v98_v6 = vpop.f32.mrf.mxu0 }
  0xe4   :  { %v111_v7 = vadd.f32 %v145_v5, %v98_v6 }
  0xe5   :  { %v155_v8 = vpop.f32.mrf.mxu0 }
  0xe6   :  { %v113_v9 = vsel %vm112_vm2, %v111_v7, -inf }
  0xe7   :  { %114 = vmax.xlane.f32.xlu0 %v113_v9  ;;  %v101_v10 = vpop.f32.mrf.mxu0 }
  0xe9   :  { %v156_v11 = vpop.f32.mrf.mxu0 }
 0x170   :  { %v115_v12 = vpop.xlane.xlu0 %114 }
 0x171   :  { %v116_v13 = vsub.f32 %v111_v7, %v115_v12 }
 0x173   :  { %v117_v14 = vmul.f32 1.442695, %v116_v13 }
 0x175   :  { %166 = vpow2.f32 %v117_v14 }
 0x182   :  { %v167_v15 = vpop.eup %166 }
 0x183   :  { %v119_v16 = vsel %vm112_vm2, %v167_v15, 0.0 }
 0x184   :  { %120 = vadd.xlane.f32.xlu0 %v119_v16 }
 0x20d   :  { %v121_v17 = vpop.xlane.xlu0 %120 }
 0x20e   :  { %168 = vlog2.f32 %v121_v17 }
 0x21b   :  { %v169_v18 = vpop.eup %168 }
 0x21c   :  { %v123_v19 = vmul.f32 0.6931472, %v169_v18 }
 0x21e   :  { %v124_v20 = vsub.f32 %v116_v13, %v123_v19 }
 0x220   :  { %125 = vst.msk [vmem:[#allocation7] sm:$0xff] %vm112_vm2, %v124_v20 }
 0x221   :  { %221 = shalt.err (!%p218_p0)
}
 0x222   :  { %135 = dma.vmem_to_hbm [thread:$0]  %s133_s2, 128, %s281_s3, [#allocation4]  }
 0x223   :  { %234 = dma.done.wait [#allocation4], 128  }
 0x224   :  { %235 = vsyncadd [#allocation4], 4294967168 }
 0x225   :  { %139 = vsyncpa [#allocation3], 1 }
 0x226   :  { %140 = vsyncpa [#allocation6], 1 }
 0x227   :  { %141 = vsyncpa [#allocation4], 1 }

</bundles_post_ra>
